<compile_context>
chip_gen: v7x
topology: tpu7x:2x2x1
jax: 0.10.0
libtpu: 0.0.40
codegen_flags: <defaults>
</compile_context>

<pallas_src>
import jax
import jax.numpy as jnp
from jax.experimental import pallas as pl
from jax.experimental.pallas import tpu as pltpu

EPS = 1e-7
LANE = 512             # lane-dense slab width (multiple of 128)
MAX_BLOCK_ROWS = 1024  # 1024x512 f32 tile = 2 MiB; 2 inputs x 2 buffers = 8 MiB VMEM
NUM_PARALLEL = 2       # leading grid axis -> megacore split on v7x, cheap loop elsewhere
PAD_LOGIT = -1e9       # padded logits: bce term exactly 0, binarized output 0


def _round_up(n: int, m: int) -> int:
    return ((n + m - 1) // m) * m


def _bce_iou_kernel(x_ref, t_ref, out_ref, acc_inter, acc_den, acc_bce):
    s = pl.program_id(1)

    @pl.when(s == 0)
    def _init():
        acc_inter[...] = jnp.zeros_like(acc_inter)
        acc_den[...] = jnp.zeros_like(acc_den)
        acc_bce[...] = jnp.zeros_like(acc_bce)

    x = x_ref[...].astype(jnp.float32)   # logits
    t = t_ref[...].astype(jnp.float32)   # targets in [0, 1]

    # hard binarization: sigmoid(x) > 0.5  <=>  x > 0  (exact for threshold=0.5)
    ob = (x > 0.0).astype(jnp.float32)
    ti = t * ob
    # numerically stable BCE-with-logits contributions
    bce = jnp.maximum(x, 0.0) - x * t + jnp.log1p(jnp.exp(-jnp.abs(x)))

    # per-lane partial sums (keepdims vector accumulators; scalar reduce deferred)
    acc_inter[...] += jnp.sum(ti, axis=0, keepdims=True)
    acc_den[...] += jnp.sum(t + ob - ti, axis=0, keepdims=True)   # = union - inter
    acc_bce[...] += jnp.sum(bce, axis=0, keepdims=True)

    @pl.when(s == pl.num_programs(1) - 1)
    def _finalize():
        out_ref[...] = jnp.concatenate(
            [acc_inter[...], acc_den[...], acc_bce[...]], axis=0)


def bce_iou_loss(outputs, targets, eps=EPS):
    """outputs, targets: same-shaped float arrays (e.g. NCHW). Returns scalar loss."""
    assert outputs.shape == targets.shape
    total = int(outputs.size)

    rows = -(-total // LANE)
    block_rows = min(MAX_BLOCK_ROWS, _round_up(rows, 8))
    padded_rows = _round_up(rows, block_rows * NUM_PARALLEL)
    steps = padded_rows // (block_rows * NUM_PARALLEL)
    pad = padded_rows * LANE - total

    x2 = jnp.pad(outputs.reshape(-1), (0, pad),
                 constant_values=PAD_LOGIT).reshape(padded_rows, LANE)
    t2 = jnp.pad(targets.reshape(-1), (0, pad)).reshape(padded_rows, LANE)

    padded_elems = padded_rows * LANE
    cost = pl.CostEstimate(
        flops=12 * padded_elems,
        transcendentals=2 * padded_elems,
        bytes_accessed=2 * padded_elems * x2.dtype.itemsize
        + NUM_PARALLEL * 3 * LANE * 4,
    )

    partials = pl.pallas_call(
        _bce_iou_kernel,
        out_shape=jax.ShapeDtypeStruct((NUM_PARALLEL, 3, LANE), jnp.float32),
        grid_spec=pltpu.PrefetchScalarGridSpec(
            num_scalar_prefetch=0,
            grid=(NUM_PARALLEL, steps),
            in_specs=[
                pl.BlockSpec((block_rows, LANE), lambda p, s: (p * steps + s, 0)),
                pl.BlockSpec((block_rows, LANE), lambda p, s: (p * steps + s, 0)),
            ],
            out_specs=pl.BlockSpec((None, 3, LANE), lambda p, s: (p, 0, 0)),
            scratch_shapes=[pltpu.VMEM((1, LANE), jnp.float32)] * 3,
        ),
        compiler_params=pltpu.CompilerParams(
            dimension_semantics=("parallel", "arbitrary"),
            vmem_limit_bytes=32 * 1024 * 1024,
        ),
        cost_estimate=cost,
    )(x2, t2)

    # Tiny scalar finalize in the wrapper (combines the per-core/per-lane partials).
    inter = jnp.sum(partials[:, 0, :])
    den = jnp.sum(partials[:, 1, :])            # union - inter
    bce_sum = jnp.sum(partials[:, 2, :])

    iou = inter / (den + eps)
    return (1.0 - iou) + bce_sum / jnp.float32(total)


def _reference(outputs, targets):
    x = outputs.astype(jnp.float32)
    t = targets.astype(jnp.float32)
    ob = (jax.nn.sigmoid(x) > 0.5).astype(jnp.float32)
    inter = jnp.sum(t * ob)
    union = jnp.sum(t) + jnp.sum(ob)
    iou = inter / (union - inter + EPS)
    bce = jnp.mean(jnp.maximum(x, 0.0) - x * t + jnp.log1p(jnp.exp(-jnp.abs(x))))
    return (1.0 - iou) + bce


if __name__ == "__main__":
    key = jax.random.PRNGKey(0)
    k1, k2 = jax.random.split(key)
    # Small segmentation-style NCHW inputs.
    outputs = jax.random.normal(k1, (2, 4, 16, 16), dtype=jnp.float32)
    targets = (jax.random.uniform(k2, (2, 4, 16, 16)) > 0.5).astype(jnp.float32)

    loss = bce_iou_loss(outputs, targets)
    jax.block_until_ready(loss)

    ref = _reference(outputs, targets)
    assert jnp.allclose(loss, ref, atol=1e-5, rtol=1e-5), (loss, ref)

    print("KERNEL_OK")
</pallas_src>

<mosaic_0001>
module attributes {stable_mosaic.version = 11 : i64} {
  func.func @_bce_iou_kernel(%arg0: i32, %arg1: i32, %arg2: memref<8x512xf32, #tpu.memory_space<vmem>>, %arg3: memref<8x512xf32, #tpu.memory_space<vmem>>, %arg4: memref<1x3x512xf32, #tpu.memory_space<vmem>>, %arg5: memref<1x512xf32, #tpu.memory_space<vmem>>, %arg6: memref<1x512xf32, #tpu.memory_space<vmem>>, %arg7: memref<1x512xf32, #tpu.memory_space<vmem>>) attributes {dimension_semantics = [#tpu.dimension_semantics<parallel>, #tpu.dimension_semantics<arbitrary>], iteration_bounds = array<i64: 2, 1>, scalar_prefetch = 0 : i64, scratch_operands = 3 : i64, tpu.core_type = #tpu.core_type<tc>, window_params = [{transform_indices = @transform_0, window_bounds = array<i64: 8, 512>}, {transform_indices = @transform_1, window_bounds = array<i64: 8, 512>}, {transform_indices = @transform_2, window_bounds = array<i64: 1, 3, 512>}]} {
    %c0_i32 = arith.constant 0 : i32
    %0 = arith.cmpi eq, %arg1, %c0_i32 : i32
    %1 = arith.extui %0 : i1 to i32
    %c0_i32_0 = arith.constant 0 : i32
    %2 = arith.cmpi ne, %1, %c0_i32_0 : i32
    scf.if %2 {
      %cst_23 = arith.constant 0.000000e+00 : f32
      %40 = vector.broadcast %cst_23 : f32 to vector<1x512xf32>
      %c0_24 = arith.constant 0 : index
      %c0_25 = arith.constant 0 : index
      %41 = vector.load %arg5[%c0_24, %c0_25] : memref<1x512xf32, #tpu.memory_space<vmem>>, vector<1x512xf32>
      tpu.vector_store %arg5[%c0_24, %c0_25], %40 {strides = array<i32>} : memref<1x512xf32, #tpu.memory_space<vmem>>, vector<1x512xf32>,
      %cst_26 = arith.constant 0.000000e+00 : f32
      %42 = vector.broadcast %cst_26 : f32 to vector<1x512xf32>
      %c0_27 = arith.constant 0 : index
      %c0_28 = arith.constant 0 : index
      %43 = vector.load %arg6[%c0_27, %c0_28] : memref<1x512xf32, #tpu.memory_space<vmem>>, vector<1x512xf32>
      tpu.vector_store %arg6[%c0_27, %c0_28], %42 {strides = array<i32>} : memref<1x512xf32, #tpu.memory_space<vmem>>, vector<1x512xf32>,
      %cst_29 = arith.constant 0.000000e+00 : f32
      %44 = vector.broadcast %cst_29 : f32 to vector<1x512xf32>
      %c0_30 = arith.constant 0 : index
      %c0_31 = arith.constant 0 : index
      %45 = vector.load %arg7[%c0_30, %c0_31] : memref<1x512xf32, #tpu.memory_space<vmem>>, vector<1x512xf32>
      tpu.vector_store %arg7[%c0_30, %c0_31], %44 {strides = array<i32>} : memref<1x512xf32, #tpu.memory_space<vmem>>, vector<1x512xf32>,
    } else {
    }
    %c0 = arith.constant 0 : index
    %c0_1 = arith.constant 0 : index
    %3 = vector.load %arg2[%c0, %c0_1] : memref<8x512xf32, #tpu.memory_space<vmem>>, vector<8x512xf32>
    %c0_2 = arith.constant 0 : index
    %c0_3 = arith.constant 0 : index
    %4 = vector.load %arg3[%c0_2, %c0_3] : memref<8x512xf32, #tpu.memory_space<vmem>>, vector<8x512xf32>
    %cst = arith.constant 0.000000e+00 : f32
    %5 = vector.broadcast %cst : f32 to vector<8x512xf32>
    %6 = arith.cmpf ogt, %3, %5 : vector<8x512xf32>
    %7 = arith.extui %6 : vector<8x512xi1> to vector<8x512xi32>
    %8 = arith.sitofp %7 : vector<8x512xi32> to vector<8x512xf32>
    %9 = arith.mulf %4, %8 : vector<8x512xf32>
    %cst_4 = arith.constant 0.000000e+00 : f32
    %10 = vector.broadcast %cst_4 : f32 to vector<8x512xf32>
    %11 = arith.maximumf %3, %10 : vector<8x512xf32>
    %12 = arith.mulf %3, %4 : vector<8x512xf32>
    %13 = arith.subf %11, %12 : vector<8x512xf32>
    %14 = math.absf %3 : vector<8x512xf32>
    %cst_5 = arith.constant 0.000000e+00 : f32
    %15 = vector.broadcast %cst_5 : f32 to vector<8x512xf32>
    %16 = arith.subf %15, %14 : vector<8x512xf32>
    %17 = math.exp %16 : vector<8x512xf32>
    %18 = math.log1p %17 : vector<8x512xf32>
    %19 = arith.addf %13, %18 : vector<8x512xf32>
    %c0_6 = arith.constant 0 : index
    %c0_7 = arith.constant 0 : index
    %20 = vector.load %arg5[%c0_6, %c0_7] : memref<1x512xf32, #tpu.memory_space<vmem>>, vector<1x512xf32>
    %cst_8 = arith.constant dense<0.000000e+00> : vector<512xf32>
    %21 = vector.multi_reduction <add>, %9, %cst_8 [0] : vector<8x512xf32> to vector<512xf32>
    %22 = vector.shape_cast %21 : vector<512xf32> to vector<1x512xf32>
    %23 = arith.addf %20, %22 : vector<1x512xf32>
    %c0_9 = arith.constant 0 : index
    %c0_10 = arith.constant 0 : index
    %24 = vector.load %arg5[%c0_9, %c0_10] : memref<1x512xf32, #tpu.memory_space<vmem>>, vector<1x512xf32>
    tpu.vector_store %arg5[%c0_9, %c0_10], %23 {strides = array<i32>} : memref<1x512xf32, #tpu.memory_space<vmem>>, vector<1x512xf32>,
    %c0_11 = arith.constant 0 : index
    %c0_12 = arith.constant 0 : index
    %25 = vector.load %arg6[%c0_11, %c0_12] : memref<1x512xf32, #tpu.memory_space<vmem>>, vector<1x512xf32>
    %26 = arith.addf %4, %8 : vector<8x512xf32>
    %27 = arith.subf %26, %9 : vector<8x512xf32>
    %cst_13 = arith.constant dense<0.000000e+00> : vector<512xf32>
    %28 = vector.multi_reduction <add>, %27, %cst_13 [0] : vector<8x512xf32> to vector<512xf32>
    %29 = vector.shape_cast %28 : vector<512xf32> to vector<1x512xf32>
    %30 = arith.addf %25, %29 : vector<1x512xf32>
    %c0_14 = arith.constant 0 : index
    %c0_15 = arith.constant 0 : index
    %31 = vector.load %arg6[%c0_14, %c0_15] : memref<1x512xf32, #tpu.memory_space<vmem>>, vector<1x512xf32>
    tpu.vector_store %arg6[%c0_14, %c0_15], %30 {strides = array<i32>} : memref<1x512xf32, #tpu.memory_space<vmem>>, vector<1x512xf32>,
    %c0_16 = arith.constant 0 : index
    %c0_17 = arith.constant 0 : index
    %32 = vector.load %arg7[%c0_16, %c0_17] : memref<1x512xf32, #tpu.memory_space<vmem>>, vector<1x512xf32>
    %cst_18 = arith.constant dense<0.000000e+00> : vector<512xf32>
    %33 = vector.multi_reduction <add>, %19, %cst_18 [0] : vector<8x512xf32> to vector<512xf32>
    %34 = vector.shape_cast %33 : vector<512xf32> to vector<1x512xf32>
    %35 = arith.addf %32, %34 : vector<1x512xf32>
    %c0_19 = arith.constant 0 : index
    %c0_20 = arith.constant 0 : index
    %36 = vector.load %arg7[%c0_19, %c0_20] : memref<1x512xf32, #tpu.memory_space<vmem>>, vector<1x512xf32>
    tpu.vector_store %arg7[%c0_19, %c0_20], %35 {strides = array<i32>} : memref<1x512xf32, #tpu.memory_space<vmem>>, vector<1x512xf32>,
    %c0_i32_21 = arith.constant 0 : i32
    %37 = arith.cmpi eq, %arg1, %c0_i32_21 : i32
    %38 = arith.extui %37 : i1 to i32
    %c0_i32_22 = arith.constant 0 : i32
    %39 = arith.cmpi ne, %38, %c0_i32_22 : i32
    scf.if %39 {
      %c0_23 = arith.constant 0 : index
      %c0_24 = arith.constant 0 : index
      %40 = vector.load %arg5[%c0_23, %c0_24] : memref<1x512xf32, #tpu.memory_space<vmem>>, vector<1x512xf32>
      %c0_25 = arith.constant 0 : index
      %c0_26 = arith.constant 0 : index
      %41 = vector.load %arg6[%c0_25, %c0_26] : memref<1x512xf32, #tpu.memory_space<vmem>>, vector<1x512xf32>
      %c0_27 = arith.constant 0 : index
      %c0_28 = arith.constant 0 : index
      %42 = vector.load %arg7[%c0_27, %c0_28] : memref<1x512xf32, #tpu.memory_space<vmem>>, vector<1x512xf32>
      %43 = tpu.concatenate %40, %41, %42 in 0 : vector<1x512xf32>, vector<1x512xf32>, vector<1x512xf32> -> vector<3x512xf32>
      %c0_29 = arith.constant 0 : index
      %c0_30 = arith.constant 0 : index
      %c0_31 = arith.constant 0 : index
      %44 = vector.load %arg4[%c0_29, %c0_30, %c0_31] : memref<1x3x512xf32, #tpu.memory_space<vmem>>, vector<1x3x512xf32>
      %45 = vector.shape_cast %44 : vector<1x3x512xf32> to vector<3x512xf32>
      %46 = vector.shape_cast %43 : vector<3x512xf32> to vector<1x3x512xf32>
      tpu.vector_store %arg4[%c0_29, %c0_30, %c0_31], %46 {strides = array<i32>} : memref<1x3x512xf32, #tpu.memory_space<vmem>>, vector<1x3x512xf32>,
    } else {
    }
    return
  }
  func.func @transform_0(%arg0: i32, %arg1: i32) -> (i32, i32) {
    %c1_i32 = arith.constant 1 : i32
    %0 = arith.muli %arg0, %c1_i32 : i32
    %1 = arith.addi %0, %arg1 : i32
    %c0_i32 = arith.constant 0 : i32
    %c0_i32_0 = arith.constant 0 : i32
    return %1, %c0_i32 : i32, i32
  }
  func.func @transform_1(%arg0: i32, %arg1: i32) -> (i32, i32) {
    %c1_i32 = arith.constant 1 : i32
    %0 = arith.muli %arg0, %c1_i32 : i32
    %1 = arith.addi %0, %arg1 : i32
    %c0_i32 = arith.constant 0 : i32
    %c0_i32_0 = arith.constant 0 : i32
    return %1, %c0_i32 : i32, i32
  }
  func.func @transform_2(%arg0: i32, %arg1: i32) -> (i32, i32, i32) {
    %c0_i32 = arith.constant 0 : i32
    %c0_i32_0 = arith.constant 0 : i32
    %c0_i32_1 = arith.constant 0 : i32
    return %arg0, %c0_i32, %c0_i32_0 : i32, i32, i32
  }
}

</mosaic_0001>

<bundles_post_ra>
// kernel: tpu_custom_call.1
= control target key start
LH: loop header
LB: loop body
LE: loop exit
PB: predicated region body
PF: predicated region fallthrough
CT: control target
= control target key end

     0   :  { %7 = vsyncpa [#allocation6], 0  ;;  %s1203_s0 = inlined_call_operand.hbm [shape: f32[16,512], index: 0, kind: input, shape index: {}]   ;;  %s1204_s1 = inlined_call_operand.hbm [shape: f32[16,512], index: 1, kind: input, shape index: {}]   ;;  %s1205_s2 = inlined_call_operand.vmem [shape: f32[2,3,512], index: 2, kind: output, shape index: {}]  }
   0x1   :  { %9 = vsyncpa [#allocation6 + $0x1], 0 }
   0x2   :  { %10 = vsyncpa [#allocation8], 0 }
   0x3   :  { %12 = vsyncpa [#allocation8 + $0x1], 0  ;;  %s929_s9 = smov 0   ;;  %s931_s10 = smov 0  }
   0x4   :  { %s933_s11 = smov 0   ;;  %s935_s12 = smov 0  }
   0x5   :  { %s937_s13 = smov 0   ;;  %s939_s14 = smov 0  }
   0x6 LB: > { %s692_s15 = sadd.s32 4294967295, %s908_s14   ;;  %s30_s16 = sadd.s32 1, %s904_s13  ;;  %s908_s14 = sphi %s939_s14, %s18_s14   ;;  %s904_s13 = sphi %s937_s13, %s1225_s13   ;;  %s900_s12 = sphi %s935_s12, %s1224_s12   ;;  %s896_s11 = sphi %s933_s11, %s1223_s11   ;;  %s892_s10 = sphi %s931_s10, %s1222_s10   ;;  %s888_s9 = sphi %s929_s9, %s1221_s9  }
   0x7   : > { %p32_p0 = scmp.ge.s32.totalorder %s30_s16, 2  ;;  %s39_s17 = sadd.s32 1, %s896_s11 }
   0x8   : > { %p46_p1 = scmp.ne.s32.totalorder %s896_s11, %s892_s10  ;;  %p47_p2 = scmp.eq.s32.totalorder %s908_s14, 0 }
   0x9   : > { %s1227_s16 = smov (%p32_p0, %s30_s16), 0  ;;  %p52_p4 = scmp.ne.s32.totalorder %s892_s10, %s888_s9 }
   0xa   : > { %p965_p3 = por %p47_p2, %p46_p1  ;;  %s36_s19 = ssub.s32 %s904_s13, %s1227_s16 }
   0xb   : > { %p53_p5 = scmp.eq.s32.totalorder %s692_s15, 0  ;;  %p37_p6 = scmp.eq.s32.totalorder %s36_s19, 0 }
   0xc   : > { %p727_p8 = scmp.lt.s32.totalorder %s908_s14, 2  ;;  %s981_s22 = sand.u32 1, %s896_s11  }
   0xd   : > { %p972_p7 = por %p53_p5, %p52_p4  ;;  %s713_s23 = sshll.u32 %s904_s13, 9 }
   0xe   : > { %s978_s21 = scalar_select %p37_p6, %s896_s11, %s39_s17  }
   0xf   : > { %s1208_s20 = scalar_select %p972_p7, 1, 0 }
  0x10   : > { %s696_s24 = sshll.u32 %s981_s22, 5  ;;  %s990_s27 = scalar_lea.hbm %s1203_s0, %s713_s23 }
  0x11   : > { %s134_s28 = scalar_lea.vmem [#allocation5], %s696_s24  ;;  %p996_p9 = pnand %p727_p8, %p965_p3 }
  0x12   : > { %s143_s29 = sshll.u32 %s134_s28, 4  ;;  %s131_s3 = scalar_lea.sflag [#allocation6], %s981_s22  ;;  %s1000_s29 = int_to_ptr.vmem [resolvable:$true] %s143_s29 }
  0x13   : > { %s794_s4 = scalar_lea.hbm %s990_s27, 512  ;;  %p796_p13 = pneg %p996_p9 }
  0x14   : > { %p795_p12 = scmp.ne.s32.totalorder %s990_s27, %s794_s4  ;;  %s799_s7 = scalar_lea.hbm %s1203_s0, 1024 }
  0x15   : > { %p800_p2 = scmp.lt.u32.totalorder %s990_s27, %s1203_s0  ;;  %p801_p3 = scmp.lt.u32.totalorder %s799_s7, %s794_s4 }
  0x16   : > { %p797_p0 = pnand %p796_p13, %p795_p12  ;;  %p803_p5 = scmp.lt.u32.totalorder %s794_s4, %s990_s27 }
  0x17   : > { %p802_p4 = por %p801_p3, %p800_p2 }
  0x18   : > { %p798_p1 = pneg %p797_p0 }
  0x19   : > { %p804_p6 = por %p803_p5, %p802_p4 }
  0x1b   : > { %p805_p8 = pnand %p804_p6, %p798_p1 }
  0x1d   : > { %808 = shalt.err (!%p805_p8)
}
  0x1e   : > { %s809_s15 = scalar_lea.vmem %s1000_s29, 512  ;;  %s910_s17 = smov [#allocation5]  }
  0x1f   : > { %p810_p12 = scmp.ne.s32.totalorder %s1000_s29, %s809_s15  ;;  %s814_s18 = sshll.u32 %s910_s17, 4  ;;  %s815_s18 = int_to_ptr.vmem [resolvable:$false] %s814_s18 }
  0x20   : > { %s816_s19 = scalar_lea.vmem %s815_s18, 1024  ;;  %p817_p11 = scmp.lt.s32.totalorder %s1000_s29, %s815_s18 }
  0x21   : > { %p812_p0 = pnand %p810_p12, %p796_p13  ;;  %p818_p2 = scmp.lt.s32.totalorder %s816_s19, %s809_s15 }
  0x23   : > { %p813_p10 = pneg %p812_p0  ;;  %p819_p3 = por %p818_p2, %p817_p11 }
  0x25   : > { %p820_p4 = pnand %p819_p3, %p813_p10 }
  0x27   : > { %823 = shalt.err (!%p820_p4)
}
  0x28   : > { %723 = dma.hbm_to_vmem [thread:$0]  (!%p996_p9), %s990_s27, 512, %s1000_s29, %s131_s3  }
  0x29   : > { %p1210_p1 = scmp.lt.s32.totalorder %s908_s14, 3  ;;  %p1211_p5 = scmp.ge.s32.totalorder %s908_s14, 1 }
  0x2a   : > { %s1043_s4 = scalar_lea.hbm %s1204_s1, %s713_s23  ;;  %s154_s5 = scalar_lea.vmem [#allocation7], %s696_s24 }
  0x2b   : > { %p1034_p6 = pnand %p1211_p5, %p1210_p1  ;;  %s163_s6 = sshll.u32 %s154_s5, 4  ;;  %s164_s6 = int_to_ptr.vmem [resolvable:$true] %s163_s6 }
  0x2c   : > { %s151_s27 = scalar_lea.sflag [#allocation8], %s981_s22  ;;  %s824_s29 = scalar_lea.hbm %s1043_s4, 512 }
  0x2d   : > { %s1212_s25 = scalar_select %p1034_p6, 1, 0 }
  0x2e   : > { %p825_p10 = scmp.ne.s32.totalorder %s1043_s4, %s824_s29  ;;  %s829_s23 = scalar_lea.hbm %s1204_s1, 1024 }
  0x2f   : > { %p830_p12 = scmp.lt.u32.totalorder %s1043_s4, %s1204_s1  ;;  %p831_p0 = scmp.lt.u32.totalorder %s829_s23, %s824_s29 }
  0x30   : > { %p827_p11 = pnand %p825_p10, %p796_p13  ;;  %p833_p3 = scmp.lt.u32.totalorder %s824_s29, %s1043_s4 }
  0x31   : > { %p832_p2 = por %p831_p0, %p830_p12 }
  0x32   : > { %p828_p8 = pneg %p827_p11 }
  0x33   : > { %p834_p4 = por %p833_p3, %p832_p2 }
  0x35   : > { %p835_p1 = pnand %p834_p4, %p828_p8 }
  0x37   : > { %838 = shalt.err (!%p835_p1)
}
  0x38   : > { %s839_s22 = scalar_lea.vmem %s164_s6, 512  ;;  %s911_s24 = smov [#allocation7]  }
  0x39   : > { %p840_p5 = scmp.ne.s32.totalorder %s164_s6, %s839_s22  ;;  %s844_s15 = sshll.u32 %s911_s24, 4  ;;  %s845_s15 = int_to_ptr.vmem [resolvable:$false] %s844_s15 }
  0x3a   : > { %s846_s17 = scalar_lea.vmem %s845_s15, 1024  ;;  %p847_p7 = scmp.lt.s32.totalorder %s164_s6, %s845_s15 }
  0x3b   : > { %p842_p10 = pnand %p840_p5, %p796_p13  ;;  %p848_p6 = scmp.lt.s32.totalorder %s846_s17, %s839_s22 }
  0x3d   : > { %p843_p11 = pneg %p842_p10  ;;  %p849_p0 = por %p848_p6, %p847_p7 }
  0x3f   : > { %p850_p12 = pnand %p849_p0, %p843_p11 }
  0x41   : > { %853 = shalt.err (!%p850_p12)
}
  0x42   : > { %726 = dma.hbm_to_vmem [thread:$0]  (!%p996_p9), %s1043_s4, 512, %s164_s6, %s151_s27  }
  0x43   : > { %p1213_p8 = scmp.ne.s32.totalorder %s1212_s25, 0 }
  0x44   : > { %s174_s18 = sand.u32 (!%p1213_p8), 1, %s892_s10   ;;  %p1214_p13 = scmp.ne.s32.totalorder (!%p1213_p8), %s1208_s20, 0 }
  0x45   : > { %172 = sbr.rel (%p1213_p8) target bundleno = 163 (0xa3), region = 28  ;;  %s703_s19 = sshll.u32 (!%p1213_p8), %s174_s18, 5 }
  0x46   : > { %s175_s26 = scalar_lea.sflag (!%p1213_p8), [#allocation6], %s174_s18  ;;  %s178_s28 = scalar_lea.vmem (!%p1213_p8), [#allocation5], %s703_s19 }
  0x4c   : > { %879 = dma.done.wait (%p1214_p13), %s175_s26, 512  }
  0x4d   : > { %881 = vsyncadd (%p1214_p13), %s175_s26, 4294966784  ;;  %s184_s5 = scalar_lea.sflag [#allocation8], %s174_s18  ;;  %s187_s29 = scalar_lea.vmem [#allocation7], %s703_s19 }
  0x4e   : > { %883 = dma.done.wait (%p1214_p13), %s184_s5, 512  }
  0x4f   : > { %885 = vsyncadd (%p1214_p13), %s184_s5, 4294966784  ;;  %v224_v0 = vlaneseq  ;;  %v912_v2 = vmov 0.0   ;;  %v913_v3 = vmov 1966171168   ;;  %v1088_v5 = vld [vmem:[%s178_s28] sm:$0xff]  ;;  %v1090_v6 = vld [vmem:[%s178_s28 + $0x8] sm:$0xff] }
  0x50   : > { %v355_v4 = vunpack.c.l.s4 %v913_v3  ;;  %v1092_v7 = vld [vmem:[%s178_s28 + $0x10] sm:$0xff]  ;;  %v1096_v9 = vld [vmem:[%s178_s28 + $0x18] sm:$0xff]  ;;  %v1098_v10 = vld [vmem:[%s187_s29] sm:$0xff]  ;;  %vm239_vm1 = vcmp.gt.f32.partialorder %v1088_v5, 0.0  ;;  %vm240_vm2 = vcmp.gt.f32.partialorder %v1090_v6, 0.0  ;;  %p215_p7 = scmp.lt.s32.totalorder %s900_s12, 1 }
  0x51   : > { %vm1078_vm0 = vcmp.lt.s32.totalorder %v224_v0, 512  ;;  %v1094_v8 = vshrl.u32 %v224_v0, 7  ;;  %v1100_v11 = vld [vmem:[%s187_s29 + $0x8] sm:$0xff]  ;;  %vm241_vm3 = vcmp.gt.f32.partialorder %v1092_v7, 0.0  ;;  %v1105_v13 = vld [vmem:[%s187_s29 + $0x10] sm:$0xff]  ;;  %v1107_v14 = vld [vmem:[%s187_s29 + $0x18] sm:$0xff] }
  0x52   : > { %228 = vst.msk [vmem:[#allocation2] sm:$0xf] %vm1078_vm0, %v912_v2  ;;  %229 = vst.msk [vmem:[#allocation3] sm:$0xf] %vm1078_vm0, %v912_v2  ;;  %v356_v12 = vunpack.c.0.s8 %v355_v4  ;;  %vm242_vm4 = vcmp.gt.f32.partialorder %v1096_v9, 0.0  ;;  %v707_v15 = vsel %vm239_vm1, 1.0, %v912_v2 }
  0x53   : > { %230 = vst.msk [vmem:[#allocation4] sm:$0xf] %vm1078_vm0, %v912_v2  ;;  %v708_v16 = vsel %vm240_vm2, 1.0, %v912_v2  ;;  %v709_v17 = vsel %vm241_vm3, 1.0, %v912_v2  ;;  %v710_v18 = vsel %vm242_vm4, 1.0, %v912_v2  ;;  %v251_v19 = vmul.f32 %v707_v15, %v1098_v10  ;;  %s1229_s12 = smov (!%p215_p7, %s900_s12), 1 }
  0x54   : > { %v252_v20 = vmul.f32 %v708_v16, %v1100_v11  ;;  %v253_v21 = vmul.f32 %v709_v17, %v1105_v13  ;;  %v254_v22 = vmul.f32 %v710_v18, %v1107_v14  ;;  %v267_v23 = vand.u32 2147483647, %v1088_v5  ;;  %s715_s20 = sshll.u32 %s1229_s12, 4 }
  0x55   : > { %v268_v24 = vand.u32 2147483647, %v1090_v6  ;;  %v269_v25 = vand.u32 2147483647, %v1092_v7  ;;  %v270_v26 = vand.u32 2147483647, %v1096_v9  ;;  %v1119_v40 = vsub.s32 %v356_v12, %v1094_v8  ;;  %s219_s4 = scalar_lea.vmem %s1205_s2, %s715_s20 }
  0x56   : > { %v324_v27 = vrot.slane %v251_v19, 4  ;;  %v330_v28 = vrot.slane %v252_v20, 4  ;;  %v336_v29 = vrot.slane %v253_v21, 4  ;;  %v271_v30 = vsub.f32 0.0, %v267_v23 }
  0x57   : > { %v272_v31 = vsub.f32 0.0, %v268_v24  ;;  %v273_v32 = vsub.f32 0.0, %v269_v25  ;;  %v342_v33 = vrot.slane %v254_v22, 4  ;;  %v274_v34 = vsub.f32 0.0, %v270_v26 }
  0x58   : > { %v325_v35 = vadd.f32 %v324_v27, %v251_v19  ;;  %v331_v36 = vadd.f32 %v330_v28, %v252_v20  ;;  %v337_v37 = vadd.f32 %v336_v29, %v253_v21  ;;  %v275_v38 = vmul.f32 1.442695, %v271_v30 }
  0x59   : > { %v277_v39 = vmul.f32 1.442695, %v272_v31  ;;  %v343_v41 = vadd.f32 %v342_v33, %v254_v22  ;;  %v279_v42 = vmul.f32 1.442695, %v273_v32  ;;  %v281_v46 = vmul.f32 1.442695, %v274_v34 }
  0x5a   : > { %v326_v43 = vrot.slane %v325_v35, 2  ;;  %v332_v44 = vrot.slane %v331_v36, 2  ;;  %v338_v45 = vrot.slane %v337_v37, 2  ;;  %v384_v48 = vadd.f32 %v707_v15, %v1098_v10 }
  0x5b   : > { %v344_v47 = vrot.slane %v343_v41, 2  ;;  %v385_v49 = vadd.f32 %v708_v16, %v1100_v11  ;;  %778 = vpow2.f32 %v275_v38  ;;  %v386_v54 = vadd.f32 %v709_v17, %v1105_v13 }
  0x5c   : > { %v327_v50 = vadd.f32 %v326_v43, %v325_v35  ;;  %v333_v51 = vadd.f32 %v332_v44, %v331_v36  ;;  %v339_v52 = vadd.f32 %v338_v45, %v337_v37  ;;  %780 = vpow2.f32 %v277_v39  ;;  %v323_v37 = vld [vmem:[#allocation2] sm:$0xf] }
  0x5d   : > { %v345_v53 = vadd.f32 %v344_v47, %v343_v41  ;;  %v387_v55 = vadd.f32 %v710_v18, %v1107_v14  ;;  %782 = vpow2.f32 %v279_v42  ;;  %v388_v60 = vsub.f32 %v384_v48, %v251_v19 }
  0x5e   : > { %v328_v56 = vrot.slane %v327_v50, 1  ;;  %v334_v57 = vrot.slane %v333_v51, 1  ;;  %v340_v58 = vrot.slane %v339_v52, 1  ;;  %v389_v61 = vsub.f32 %v385_v49, %v252_v20 }
  0x5f   : > { %v346_v59 = vrot.slane %v345_v53, 1  ;;  %v390_v62 = vsub.f32 %v386_v54, %v253_v21  ;;  %v391_v3 = vsub.f32 %v387_v55, %v254_v22  ;;  %v392_v12 = vrot.slane %v388_v60, 4 }
  0x60   : > { %v329_v63 = vadd.f32 %v328_v56, %v327_v50  ;;  %v335_v0 = vadd.f32 %v334_v57, %v333_v51  ;;  %v341_v2 = vadd.f32 %v340_v58, %v339_v52  ;;  %v398_v15 = vrot.slane %v389_v61, 4 }
  0x61   : > { %v347_v4 = vadd.f32 %v346_v59, %v345_v53  ;;  %v404_v16 = vrot.slane %v390_v62, 4  ;;  %v410_v17 = vrot.slane %v391_v3, 4  ;;  %v393_v18 = vadd.f32 %v392_v12, %v388_v60 }
  0x62   : > { %v352_v23 = vcombine.low %v329_v63, %v335_v0  ;;  %v399_v25 = vadd.f32 %v398_v15, %v389_v61  ;;  %784 = vpow2.f32 %v281_v46  ;;  %v255_v0 = vmax.f32 %v1088_v5, 0.0 }
  0x63   : > { %v353_v24 = vcombine.low %v341_v2, %v347_v4  ;;  %v405_v26 = vadd.f32 %v404_v16, %v390_v62  ;;  %v411_v19 = vadd.f32 %v410_v17, %v391_v3  ;;  %v394_v21 = vrot.slane %v393_v18, 2  ;;  %v383_v4 = vld [vmem:[#allocation3] sm:$0xf] }
  0x64   : > { %v360_v27 = vrot.slane %v352_v23, %v1119_v40  ;;  %v400_v28 = vrot.slane %v399_v25, 2  ;;  %v259_v2 = vmul.f32 %v1098_v10, %v1088_v5  ;;  %v256_v12 = vmax.f32 %v1090_v6, 0.0 }
  0x65   : > { %v367_v20 = vrot.slane %v353_v24, %v1119_v40  ;;  %v406_v29 = vrot.slane %v405_v26, 2  ;;  %v779_v22 = vpop.eup %778  ;;  %v412_v30 = vrot.slane %v411_v19, 2  ;;  %v395_v33 = vadd.f32 %v394_v21, %v393_v18 }
  0x66   : > { %v1127_v31 = vpop.eup %780  ;;  %v401_v34 = vadd.f32 %v400_v28, %v399_v25  ;;  %v283_v45 = vadd.f32 1.0, %v779_v22  ;;  %v286_v52 = vmul.f32 -0.5, %v779_v22  ;;  %v289_v3 = vand.u32 2147483647, %v779_v22 }
  0x67   : > { %v368_v32 = vcombine.low %v360_v27, %v367_v20  ;;  %v407_v35 = vadd.f32 %v406_v29, %v405_v26  ;;  %v1129_v36 = vpop.eup %782  ;;  %v413_v38 = vadd.f32 %v412_v30, %v411_v19  ;;  %v396_v41 = vrot.slane %v395_v33, 1 }
  0x68   : > { %v402_v42 = vrot.slane %v401_v34, 1  ;;  %786 = vlog2.f32 %v283_v45  ;;  %v292_v53 = vadd.f32 1.0, %v1127_v31  ;;  %v301_v56 = vadd.f32 1.0, %v1129_v36 }
  0x69   : > { %v375_v39 = vrot.slane %v368_v32, %v1119_v40  ;;  %v408_v43 = vrot.slane %v407_v35, 1  ;;  %v414_v44 = vrot.slane %v413_v38, 1  ;;  %v397_v47 = vadd.f32 %v396_v41, %v395_v33 }
  0x6a   : > { %v403_v48 = vadd.f32 %v402_v42, %v401_v34  ;;  %788 = vlog2.f32 %v292_v53  ;;  %v295_v59 = vmul.f32 -0.5, %v1127_v31  ;;  %v287_v60 = vadd.f32 1.0, %v286_v52 }
  0x6b   : > { %v377_v46 = vadd.f32 %v375_v39, %v323_v37  ;;  %v409_v49 = vadd.f32 %v408_v43, %v407_v35  ;;  %v415_v50 = vadd.f32 %v414_v44, %v413_v38  ;;  %790 = vlog2.f32 %v301_v56 }
  0x6c   : > { %v420_v51 = vcombine.low %v397_v47, %v403_v48  ;;  %v785_v54 = vpop.eup %784  ;;  %v304_v61 = vmul.f32 -0.5, %v1129_v36  ;;  %v257_v15 = vmax.f32 %v1092_v7, 0.0  ;;  %v260_v23 = vmul.f32 %v1100_v11, %v1090_v6 }
  0x6d   : > { %382 = vst.msk [vmem:[#allocation2] sm:$0xf] %vm1078_vm0, %v377_v46  ;;  %v421_v55 = vcombine.low %v409_v49, %v415_v50  ;;  %v310_v62 = vadd.f32 1.0, %v785_v54  ;;  %v296_v17 = vadd.f32 1.0, %v295_v59  ;;  %v313_v24 = vmul.f32 -0.5, %v785_v54 }
  0x6e   : > { %v428_v57 = vrot.slane %v420_v51, %v1119_v40  ;;  %v261_v18 = vmul.f32 %v1105_v13, %v1092_v7  ;;  %v288_v25 = vmul.f32 %v779_v22, %v287_v60  ;;  %v298_v5 = vand.u32 2147483647, %v1127_v31 }
  0x6f   : > { %v435_v58 = vrot.slane %v421_v55, %v1119_v40  ;;  %792 = vlog2.f32 %v310_v62  ;;  %v305_v10 = vadd.f32 1.0, %v304_v61  ;;  %v263_v19 = vsub.f32 %v255_v0, %v259_v2 }
  0x70   : > { %vm1151_vm5 = vcmp.lt.f32.partialorder %v289_v3, 0.0004427343  ;;  %v307_v21 = vand.u32 2147483647, %v1129_v36  ;;  %v258_v6 = vmax.f32 %v1096_v9, 0.0  ;;  %v262_v7 = vmul.f32 %v1107_v14, %v1096_v9 }
  0x71   : > { %v436_v63 = vcombine.low %v428_v57, %v435_v58  ;;  %v264_v13 = vsub.f32 %v256_v12, %v260_v23  ;;  %v297_v28 = vmul.f32 %v1127_v31, %v296_v17  ;;  %v314_v29 = vadd.f32 1.0, %v313_v24 }
  0x72   : > { %v787_v26 = vpop.eup %786  ;;  %vm1164_vm6 = vcmp.lt.f32.partialorder %v298_v5, 0.0004427343  ;;  %v306_v33 = vmul.f32 %v1129_v36, %v305_v10  ;;  %v316_v34 = vand.u32 2147483647, %v785_v54  ;;  %v265_v37 = vsub.f32 %v257_v15, %v261_v18  ;;  %v447_v10 = vld [vmem:[#allocation4] sm:$0xf] }
  0x73   : > { %v443_v16 = vrot.slane %v436_v63, %v1119_v40  ;;  %v285_v11 = vmul.f32 0.6931472, %v787_v26  ;;  %vm308_vm7 = vcmp.lt.f32.partialorder %v307_v21, 0.0004427343  ;;  %v315_v39 = vmul.f32 %v785_v54, %v314_v29 }
  0x74   : > { %v789_v22 = vpop.eup %788  ;;  %v266_v43 = vsub.f32 %v258_v6, %v262_v7  ;;  %vm317_vm8 = vcmp.lt.f32.partialorder %v316_v34, 0.0004427343  ;;  %v516_v20 = vsub.s32 1, %v1094_v8  ;;  %v520_v21 = vsub.s32 2, %v1094_v8 }
  0x75   : > { %v445_v27 = vadd.f32 %v443_v16, %v383_v4  ;;  %v291_v30 = vsel %vm1151_vm5, %v288_v25, %v285_v11  ;;  %v791_v35 = vpop.eup %790  ;;  %v294_v38 = vmul.f32 0.6931472, %v789_v22  ;;  %v524_v6 = vsub.s32 3, %v1094_v8  ;;  %v506_v11 = vld [vmem:[#allocation2] sm:$0xf] }
  0x76   : > { %v319_v9 = vadd.f32 %v291_v30, %v263_v19  ;;  %v303_v14 = vmul.f32 0.6931472, %v791_v35  ;;  %v521_v29 = vrot.slane %v506_v11, %v520_v21  ;;  %vm572_vm9 = vcmask 1040384  }
  0x77   : > { %446 = vst.msk [vmem:[#allocation3] sm:$0xf] %vm1078_vm0, %v445_v27  ;;  %v300_v31 = vsel %vm1164_vm6, %v297_v28, %v294_v38  ;;  %v512_v27 = vsub.s32 0, %v1094_v8  ;;  %v517_v28 = vrot.slane %v506_v11, %v516_v20  ;;  %v525_v22 = vrot.slane %v506_v11, %v524_v6 }
  0x78   : > { %v448_v41 = vrot.slane %v319_v9, 4  ;;  %v309_v44 = vsel %vm308_vm7, %v306_v33, %v303_v14  ;;  %v320_v45 = vadd.f32 %v300_v31, %v264_v13  ;;  %vm577_vm10 = vcmask 1041408  }
  0x79   : > { %v793_v42 = vpop.eup %792  ;;  %v321_v47 = vadd.f32 %v309_v44, %v265_v37  ;;  %v513_v13 = vrot.slane %v506_v11, %v512_v27 }
  0x7a   : > { %v312_v46 = vmul.f32 0.6931472, %v793_v42  ;;  %v449_v36 = vadd.f32 %v448_v41, %v319_v9  ;;  %v454_v48 = vrot.slane %v320_v45, 4 }
  0x7b   : > { %v460_v51 = vrot.slane %v321_v47, 4 }
  0x7c   : > { %v318_v49 = vsel %vm317_vm8, %v315_v39, %v312_v46  ;;  %v450_v50 = vrot.slane %v449_v36, 2  ;;  %v455_v53 = vadd.f32 %v454_v48, %v320_v45 }
  0x7d   : > { %v322_v52 = vadd.f32 %v318_v49, %v266_v43  ;;  %v461_v56 = vadd.f32 %v460_v51, %v321_v47 }
  0x7e   : > { %v451_v55 = vadd.f32 %v450_v50, %v449_v36  ;;  %v456_v57 = vrot.slane %v455_v53, 2  ;;  %v507_v7 = vld [vmem:[#allocation3] sm:$0xf] }
  0x7f   : > { %v466_v58 = vrot.slane %v322_v52, 4  ;;  %v462_v59 = vrot.slane %v461_v56, 2  ;;  %v538_v30 = vrot.slane %v507_v7, %v516_v20  ;;  %v542_v32 = vrot.slane %v507_v7, %v520_v21 }
  0x80   : > { %v452_v54 = vrot.slane %v451_v55, 1  ;;  %v457_v60 = vadd.f32 %v456_v57, %v455_v53  ;;  %v546_v33 = vrot.slane %v507_v7, %v524_v6 }
  0x81   : > { %v467_v61 = vadd.f32 %v466_v58, %v322_v52  ;;  %v463_v62 = vadd.f32 %v462_v59, %v461_v56  ;;  %v574_v35 = vsel %vm572_vm9, %v517_v28, %v538_v30  ;;  %v575_v37 = vsel %vm572_vm9, %v521_v29, %v542_v32 }
  0x82   : > { %v453_v63 = vadd.f32 %v452_v54, %v451_v55  ;;  %v458_v0 = vrot.slane %v457_v60, 1  ;;  %v576_v38 = vsel %vm572_vm9, %v525_v22, %v546_v33 }
  0x83   : > { %v468_v2 = vrot.slane %v467_v61, 2  ;;  %v464_v3 = vrot.slane %v463_v62, 1 }
  0x84   : > { %v459_v4 = vadd.f32 %v458_v0, %v457_v60 }
  0x85   : > { %v469_v12 = vadd.f32 %v468_v2, %v467_v61  ;;  %v465_v15 = vadd.f32 %v464_v3, %v463_v62 }
  0x86   : > { %v476_v23 = vcombine.low %v453_v63, %v459_v4 }
  0x87   : > { %v470_v16 = vrot.slane %v469_v12, 1 }
  0x88   : > { %v484_v18 = vrot.slane %v476_v23, %v1119_v40 }
  0x89   : > { %v471_v17 = vadd.f32 %v470_v16, %v469_v12 }
  0x8b   : > { %v477_v24 = vcombine.low %v465_v15, %v471_v17 }
  0x8d   : > { %v491_v25 = vrot.slane %v477_v24, %v1119_v40 }
  0x8f   : > { %v492_v5 = vcombine.low %v484_v18, %v491_v25 }
  0x91   : > { %v499_v26 = vrot.slane %v492_v5, %v1119_v40  ;;  %v534_v40 = vrot.slane %v507_v7, %v512_v27 }
  0x93   : > { %v501_v19 = vadd.f32 %v499_v26, %v447_v10  ;;  %v573_v8 = vsel %vm572_vm9, %v513_v13, %v534_v40 }
  0x95   : > { %502 = vst.msk [vmem:[#allocation4] sm:$0xf] %vm1078_vm0, %v501_v19 }
  0x9c   : > { %v508_v34 = vld [vmem:[#allocation4] sm:$0xf] }
  0x9d   : > { %v555_v1 = vrot.slane %v508_v34, %v512_v27  ;;  %v559_v9 = vrot.slane %v508_v34, %v516_v20  ;;  %v563_v14 = vrot.slane %v508_v34, %v520_v21  ;;  %v567_v31 = vrot.slane %v508_v34, %v524_v6 }
  0x9f   : > { %v578_v39 = vsel %vm577_vm10, %v573_v8, %v555_v1  ;;  %v579_v41 = vsel %vm577_vm10, %v574_v35, %v559_v9  ;;  %v580_v42 = vsel %vm577_vm10, %v575_v37, %v563_v14  ;;  %v581_v43 = vsel %vm577_vm10, %v576_v38, %v567_v31 }
  0xa0   : > { %v586_v44 = vcombine.low %v578_v39, %v579_v41  ;;  %v587_v45 = vcombine.low %v580_v42, %v581_v43 }
  0xa2   : > { %590 = vst [vmem:[%s219_s4] sm:$0x77] %v586_v44  ;;  %591 = vst [vmem:[%s219_s4 + $0x8] sm:$0x77] %v587_v45 }
  0xa3 PF: > { %s18_s14 = sadd.s32 1, %s908_s14   ;;  %s1221_s9 = smov %s892_s10 }
  0xa4   : > { %p15_p9 = scmp.ge.s32.totalorder %s18_s14, 4   ;;  %s1222_s10 = smov %s896_s11 }
  0xa5   : > { %s1223_s11 = smov %s978_s21  ;;  %s1224_s12 = smov %s904_s13 }
  0xa6   : > { %s1225_s13 = smov %s1227_s16  ;;  %17 = sbr.rel (!%p15_p9) target bundleno = 6 (0x6), region = 89 }
  0xad   :  { %613 = vsyncpa [#allocation6], 1 }
  0xae   :  { %615 = vsyncpa [#allocation6 + $0x1], 1 }
  0xaf   :  { %616 = vsyncpa [#allocation8], 1 }
  0xb0   :  { %618 = vsyncpa [#allocation8 + $0x1], 1 }

</bundles_post_ra>
